<compile_context>
chip_gen: v6e
topology: v6e:2x2x1
jax: 0.10.0
libtpu: 0.0.40
codegen_flags: <defaults>
</compile_context>

<pallas_src>
import functools

import jax
import jax.numpy as jnp
from jax.experimental import pallas as pl
from jax.experimental.pallas import tpu as pltpu


def _round_up(x, m):
    return ((x + m - 1) // m) * m


def _edge_decoder_kernel(zr_ref, zc_ref, out_ref, *, bf16_epilogue):
    # zr_ref: (tm, H) row tile, zc_ref: (tn, H) column tile, out_ref: (tm, tn)
    zr = zr_ref[...]
    zc = zc_ref[...]
    # zr @ zc.T -> (tm, tn); MXU with f32 accumulation.
    logits = jax.lax.dot_general(
        zr, zc,
        dimension_numbers=(((1,), (1,)), ((), ())),
        preferred_element_type=jnp.float32,
    )
    # sigmoid(x) == 0.5 * tanh(0.5 * x) + 0.5   (tanh -> EUP slot)
    if bf16_epilogue:
        # v6e/v7x bf16 EUP path: narrow before the transcendental so the
        # single EUP slot is not the binding slot with bf16 writeback.
        x = (0.5 * logits).astype(jnp.bfloat16)
        out_ref[...] = (0.5 * jnp.tanh(x) + 0.5).astype(out_ref.dtype)
    else:
        # f32 math, narrow only at the final cast (required on v5e).
        out_ref[...] = (0.5 * jnp.tanh(0.5 * logits) + 0.5).astype(out_ref.dtype)


def edge_decoder_forward(z, edge_label_index=None, *, tm=512, tn=4096,
                         compute_dtype=jnp.bfloat16, out_dtype=jnp.float32,
                         bf16_epilogue=False):
    """A_adj_predicted = sigmoid(z @ z.T).

    edge_label_index is unused (matches the PyTorch module, which ignores it).

    Performance notes:
      * out_dtype=jnp.bfloat16 halves HBM writeback bytes and is ~2x faster
        on all generations (the kernel is writeback-bound at small H); the
        default stays float32 for PyTorch parity.
      * compute_dtype controls the matmul operand dtype (bf16 default,
        f32 accumulation).  Pass jnp.float32 for exact f32 logit parity.
      * bf16_epilogue=True runs the tanh in bf16 (v6e/v7x only; keep False
        on v5e, which has no bf16 VPU/EUP datapath).
    """
    del edge_label_index  # unused in the reference forward pass
    N, H = z.shape

    in_item = jnp.dtype(compute_dtype).itemsize
    out_item = jnp.dtype(out_dtype).itemsize
    # Sublane packing: bf16 vregs are (16, 128), f32 vregs are (8, 128).
    sub = 16 if in_item == 2 else 8

    # Clamp tiles for small graphs; tn stays a multiple of 128 (lane-dense,
    # unmasked stores), tm a multiple of the sublane pack factor.
    tm = min(tm, _round_up(N, sub))
    tn = min(tn, _round_up(N, 128))
    # Keep >= 2 row-tile blocks when possible so both v7x TensorCores get work.
    if pl.cdiv(N, tm) < 2 and N >= 2 * sub:
        tm = _round_up(pl.cdiv(N, 2), sub)
    grid = (pl.cdiv(N, tm), pl.cdiv(N, tn))

    # Cast matmul operands once; accumulation is f32 inside the kernel.
    z_c = z.astype(compute_dtype)

    # VMEM footprint: double-buffered output slab + double-buffered z tiles,
    # plus a little headroom for compiler scratch.  (Defaults: ~16 MiB.)
    tile_bytes = 2 * (tm * tn * out_item + (tm + tn) * H * in_item)
    vmem_limit = int(tile_bytes * 1.25) + (4 << 20)

    # HBM traffic: full output once, row tiles of z once, column tiles of z
    # re-read once per row-tile grid step.
    bytes_accessed = N * N * out_item + N * H * in_item * (1 + grid[0])
    cost = pl.CostEstimate(
        flops=2 * N * N * H,
        transcendentals=N * N,
        bytes_accessed=bytes_accessed,
    )

    kernel = functools.partial(_edge_decoder_kernel, bf16_epilogue=bf16_epilogue)

    return pl.pallas_call(
        kernel,
        out_shape=jax.ShapeDtypeStruct((N, N), out_dtype),
        grid_spec=pltpu.PrefetchScalarGridSpec(
            num_scalar_prefetch=0,
            grid=grid,
            in_specs=[
                pl.BlockSpec((tm, H), lambda i, j: (i, 0)),  # row tile of z
                pl.BlockSpec((tn, H), lambda i, j: (j, 0)),  # column tile of z
            ],
            out_specs=pl.BlockSpec((tm, tn), lambda i, j: (i, j)),
        ),
        compiler_params=pltpu.CompilerParams(
            dimension_semantics=("parallel", "parallel"),
            vmem_limit_bytes=vmem_limit,
        ),
        cost_estimate=cost,
    )(z_c, z_c)


if __name__ == "__main__":
    # EdgeDecoder.__init__(hidden_channels) defines no parameters, so there is
    # nothing to initialize beyond the input embedding z itself.
    hidden_channels = 32
    num_nodes = 128

    key = jax.random.PRNGKey(0)
    k_z, k_e = jax.random.split(key)
    z = jax.random.normal(k_z, (num_nodes, hidden_channels), dtype=jnp.float32)
    # edge_label_index: (2, E) int edge list — ignored by forward, kept for API parity
    edge_label_index = jax.random.randint(k_e, (2, 8), 0, num_nodes, dtype=jnp.int32)

    # PyTorch-parity path (f32 output).
    A_pred = edge_decoder_forward(z, edge_label_index)
    A_pred = jax.block_until_ready(A_pred)
    assert A_pred.shape == (num_nodes, num_nodes)
    assert A_pred.dtype == jnp.float32

    # Recommended fast path: bf16 output (halves HBM writeback bytes).
    A_pred_bf16 = edge_decoder_forward(z, edge_label_index, out_dtype=jnp.bfloat16)
    A_pred_bf16 = jax.block_until_ready(A_pred_bf16)
    assert A_pred_bf16.shape == (num_nodes, num_nodes)
    assert A_pred_bf16.dtype == jnp.bfloat16

    # Reference 1: same bf16-input / f32-accumulate recipe in plain JAX (tight).
    zb = z.astype(jnp.bfloat16)
    logits_ref = jax.lax.dot_general(
        zb, zb, dimension_numbers=(((1,), (1,)), ((), ())),
        preferred_element_type=jnp.float32)
    A_ref_bf16in = jax.nn.sigmoid(logits_ref)
    assert jnp.allclose(A_pred, A_ref_bf16in, atol=2e-3, rtol=0), \
        "f32-out kernel mismatch vs bf16-input reference"
    assert jnp.allclose(A_pred_bf16.astype(jnp.float32), A_ref_bf16in,
                        atol=8e-3, rtol=0), \
        "bf16-out kernel mismatch vs bf16-input reference"

    # Reference 2: full-f32 PyTorch-equivalent reference (loose, bf16 matmul inputs).
    A_ref_f32 = jax.nn.sigmoid(z @ z.T)
    assert jnp.allclose(A_pred, A_ref_f32, atol=5e-2, rtol=0), \
        "kernel mismatch vs f32 reference"

    print("KERNEL_OK")
</pallas_src>

<mosaic_0001>
module attributes {stable_mosaic.version = 11 : i64} {
  func.func @_edge_decoder_kernel(%arg0: i32, %arg1: i32, %arg2: memref<64x32xbf16, #tpu.memory_space<vmem>>, %arg3: memref<128x32xbf16, #tpu.memory_space<vmem>>, %arg4: memref<64x128xf32, #tpu.memory_space<vmem>>) attributes {dimension_semantics = [#tpu.dimension_semantics<parallel>, #tpu.dimension_semantics<parallel>], iteration_bounds = array<i64: 2, 1>, scalar_prefetch = 0 : i64, scratch_operands = 0 : i64, tpu.core_type = #tpu.core_type<tc>, window_params = [{transform_indices = @transform_0, window_bounds = array<i64: 64, 32>}, {transform_indices = @transform_1, window_bounds = array<i64: 128, 32>}, {transform_indices = @transform_2, window_bounds = array<i64: 64, 128>}]} {
    %c0 = arith.constant 0 : index
    %c0_0 = arith.constant 0 : index
    %0 = vector.load %arg2[%c0, %c0_0] : memref<64x32xbf16, #tpu.memory_space<vmem>>, vector<64x32xbf16>
    %c0_1 = arith.constant 0 : index
    %c0_2 = arith.constant 0 : index
    %1 = vector.load %arg3[%c0_1, %c0_2] : memref<128x32xbf16, #tpu.memory_space<vmem>>, vector<128x32xbf16>
    %cst = arith.constant dense<0.000000e+00> : vector<64x128xf32>
    %2 = tpu.matmul %0, %1, %cst {dimension_numbers = #tpu.dot_dimension_numbers<[1], [1], [0], [0], [0, 0, 1, 0], [], []>} : vector<64x32xbf16>, vector<128x32xbf16>, vector<64x128xf32> -> vector<64x128xf32>
    %cst_3 = arith.constant 5.000000e-01 : f32
    %3 = vector.broadcast %cst_3 : f32 to vector<64x128xf32>
    %4 = arith.mulf %3, %2 : vector<64x128xf32>
    %5 = math.tanh %4 : vector<64x128xf32>
    %cst_4 = arith.constant 5.000000e-01 : f32
    %6 = vector.broadcast %cst_4 : f32 to vector<64x128xf32>
    %7 = arith.mulf %6, %5 : vector<64x128xf32>
    %cst_5 = arith.constant 5.000000e-01 : f32
    %8 = vector.broadcast %cst_5 : f32 to vector<64x128xf32>
    %9 = arith.addf %7, %8 : vector<64x128xf32>
    %c0_6 = arith.constant 0 : index
    %c0_7 = arith.constant 0 : index
    %10 = vector.load %arg4[%c0_6, %c0_7] : memref<64x128xf32, #tpu.memory_space<vmem>>, vector<64x128xf32>
    tpu.vector_store %arg4[%c0_6, %c0_7], %9 {strides = array<i32>} : memref<64x128xf32, #tpu.memory_space<vmem>>, vector<64x128xf32>,
    return
  }
  func.func @transform_0(%arg0: i32, %arg1: i32) -> (i32, i32) {
    %c0_i32 = arith.constant 0 : i32
    %c0_i32_0 = arith.constant 0 : i32
    return %arg0, %c0_i32 : i32, i32
  }
  func.func @transform_1(%arg0: i32, %arg1: i32) -> (i32, i32) {
    %c0_i32 = arith.constant 0 : i32
    %c0_i32_0 = arith.constant 0 : i32
    return %arg1, %c0_i32 : i32, i32
  }
  func.func @transform_2(%arg0: i32, %arg1: i32) -> (i32, i32) {
    %c0_i32 = arith.constant 0 : i32
    return %arg0, %arg1 : i32, i32
  }
}

</mosaic_0001>

<bundles_post_ra>
// kernel: tpu_custom_call.1
= control target key start
LH: loop header
LB: loop body
LE: loop exit
PB: predicated region body
PF: predicated region fallthrough
CT: control target
= control target key end

     0   :  { %7 = vsyncpa [#allocation3], 0  ;;  %s965_s0 = inlined_call_operand.vmem [shape: bf16[128,32], index: 0, kind: input, shape index: {}]   ;;  %s966_s1 = inlined_call_operand.vmem [shape: bf16[128,32], index: 1, kind: input, shape index: {}]   ;;  %s967_s2 = inlined_call_operand.hbm [shape: f32[128,128], index: 2, kind: output, shape index: {}]  }
   0x1   :  { %9 = vsyncpa [#allocation3 + $0x1], 0  ;;  %s790_s9 = smov 0   ;;  %s792_s10 = smov 0  }
   0x2   :  { %s794_s11 = smov 0   ;;  %s796_s12 = smov 0  }
   0x3   :  { %s798_s13 = smov 0   ;;  %s800_s14 = smov 0  }
   0x4 LB: > { %s510_s15 = sadd.s32 4294967295, %s770_s14   ;;  %s511_s16 = sadd.s32 4294967294, %s770_s14   ;;  %s770_s14 = sphi %s800_s14, %s15_s14   ;;  %s766_s13 = sphi %s798_s13, %s974_s13   ;;  %s762_s12 = sphi %s796_s12, %s973_s12   ;;  %s758_s11 = sphi %s794_s11, %s972_s11   ;;  %s754_s10 = sphi %s792_s10, %s971_s10   ;;  %s750_s9 = sphi %s790_s9, %s970_s9  }
   0x5   : > { %s27_s17 = sadd.s32 1, %s766_s13  ;;  %s88_s18 = sadd.s32 1, %s758_s11 }
   0x6   : > { %p29_p0 = scmp.ge.s32.totalorder %s27_s17, 2  ;;  %p98_p1 = scmp.ne.s32.totalorder %s758_s11, %s754_s10 }
   0x7   : > { %p99_p2 = scmp.eq.s32.totalorder %s510_s15, 1  ;;  %p104_p3 = scmp.ne.s32.totalorder %s754_s10, %s750_s9 }
   0x8   : > { %s976_s17 = smov (%p29_p0, %s27_s17), 0  ;;  %p105_p5 = scmp.eq.s32.totalorder %s511_s16, 1 }
   0x9   : > { %p830_p4 = por %p99_p2, %p98_p1  ;;  %s83_s20 = ssub.s32 %s766_s13, %s976_s17 }
   0xa   : > { %p515_p6 = scmp.ge.s32.totalorder %s770_s14, 1  ;;  %p86_p7 = scmp.eq.s32.totalorder %s83_s20, 0 }
   0xb   : > { %p837_p8 = por %p105_p5, %p104_p3  ;;  %p141_p9 = scmp.lt.s32.totalorder %s770_s14, 3 }
   0xc   : > { %s843_s22 = scalar_select %p86_p7, %s758_s11, %s88_s18  }
   0xd   : > { %p142_p10 = pnand %p515_p6, %p141_p9 }
   0xe   : > { %s517_s27 = sshll.u32 (!%p142_p10), %s762_s12, 3  ;;  %s165_s26 = sand.u32 (!%p142_p10), 1, %s754_s10  }
   0xf   : > { %145 = sbr.rel (%p142_p10) target bundleno = 319 (0x13f), region = 28  ;;  %p169_p11 = scmp.lt.s32.totalorder (!%p142_p10), %s517_s27, 15 }
  0x10   : > { %s540_s29 = sshll.u32 (!%p142_p10), %s762_s12, 10  ;;  %s920_s12 = scalar_lea.sflag (!%p142_p10), [#allocation3], %s165_s26 }
  0x11   : > { %s772_s7 = smov (!%p142_p10), [#allocation2]  }
  0x12   : > { %s698_s8 = sshll.u32 (!%p142_p10), %s772_s7, 4  ;;  %s699_s8 = int_to_ptr.vmem [resolvable:$false] %s698_s8 }
  0x13   : > { %s700_s15 = scalar_lea.vmem (!%p142_p10), %s699_s8, 2048 }
  0x14   : > { %v666_v0 = vld [vmem:[%s966_s1 + $0x38] sm:$0xff]   ;;  %vm266_vm0 = vcmask 261120   ;;  %v667_v1 = vld [vmem:[%s966_s1 + $0x30] sm:$0xff]   ;;  %v668_v4 = vld [vmem:[%s966_s1 + $0x28] sm:$0xff]   ;;  %s978_s27 = smov (!%p169_p11, %s517_s27), 15 }
  0x15   : > { %593 = vmatprep.subr.msk.bf16.mxu0 %vm266_vm0, %v666_v0  ;;  %594 = vmatprep.subr.msk.bf16.mxu1 %vm266_vm0, %v666_v0  ;;  %v301_v2 = vsel %vm266_vm0, %v666_v0, 0  ;;  %v298_v3 = vsel %vm266_vm0, %v667_v1, 0  ;;  %s518_s30 = sshll.u32 %s978_s27, 2  ;;  %v295_v7 = vsel %vm266_vm0, %v668_v4, 0  ;;  %v669_v8 = vld [vmem:[%s966_s1 + $0x20] sm:$0xff]   ;;  %v670_v10 = vld [vmem:[%s966_s1 + $0x18] sm:$0xff]  }
  0x16   : > { %554 = vmatpush3.bf16.xpose.msra.mxu0 %v301_v2  ;;  %585 = vmatpush3.bf16.xpose.msra.mxu1 %v301_v2  ;;  %s866_s5 = scalar_lea.vmem %s965_s0, %s518_s30  ;;  %v292_v9 = vsel %vm266_vm0, %v669_v8, 0  ;;  %v289_v11 = vsel %vm266_vm0, %v670_v10, 0  ;;  %v671_v12 = vld [vmem:[%s966_s1 + $0x10] sm:$0xff]   ;;  %v672_v14 = vld [vmem:[%s966_s1 + $0x8] sm:$0xff]   ;;  %v673_v16 = vld [vmem:[%s966_s1] sm:$0xff]   ;;  %s516_s27 = sshll.u32 %s165_s26, 6 }
  0x17   : > { %595 = vmatprep.subr.msk.bf16.mxu0 %vm266_vm0, %v667_v1  ;;  %596 = vmatprep.subr.msk.bf16.mxu1 %vm266_vm0, %v667_v1  ;;  %v674_v5 = vld [vmem:[%s866_s5] sm:$0xff]   ;;  %v675_v6 = vld [vmem:[%s866_s5 + $0x10] sm:$0xff]   ;;  %v286_v13 = vsel %vm266_vm0, %v671_v12, 0  ;;  %v283_v15 = vsel %vm266_vm0, %v672_v14, 0  ;;  %v280_v17 = vsel %vm266_vm0, %v673_v16, 0  ;;  %v676_v18 = vld [vmem:[%s866_s5 + $0x8] sm:$0xff]  }
  0x18   : > { %569 = vmatprep.mubr.msk.bf16.mxu0 %vm266_vm0, %v674_v5  ;;  %573 = vmatprep.mubr.msk.bf16.mxu1 %vm266_vm0, %v675_v6  ;;  %v677_v19 = vld [vmem:[%s866_s5 + $0x18] sm:$0xff]   ;;  %s167_s28 = scalar_lea.vmem [#allocation2], %s516_s27  ;;  %s914_s5 = scalar_lea.hbm %s967_s2, %s540_s29 }
  0x19   : > { %s423_s30 = sshll.u32 %s167_s28, 4  ;;  %s916_s30 = int_to_ptr.vmem [resolvable:$true] %s423_s30 }
  0x1a   : > { %s694_s6 = scalar_lea.vmem %s916_s30, 1024  ;;  %p701_p1 = scmp.lt.s32.totalorder %s916_s30, %s699_s8 }
  0x1b   : > { %p695_p12 = scmp.ne.s32.totalorder %s916_s30, %s694_s6  ;;  %p702_p2 = scmp.lt.s32.totalorder %s700_s15, %s694_s6 }
  0x1d   : > { %p696_p13 = pnand %p695_p12, %p830_p4  ;;  %p703_p3 = por %p702_p2, %p701_p1 }
  0x1e   : > { %556 = vmatpush3.bf16.xpose.msra.mxu0 %v298_v3  ;;  %586 = vmatpush3.bf16.xpose.msra.mxu1 %v298_v3 }
  0x1f   : > { %597 = vmatprep.subr.msk.bf16.mxu0 %vm266_vm0, %v668_v4  ;;  %598 = vmatprep.subr.msk.bf16.mxu1 %vm266_vm0, %v668_v4  ;;  %p697_p0 = pneg %p696_p13 }
  0x21   : > { %p704_p5 = pnand %p703_p3, %p697_p0 }
  0x26   : > { %558 = vmatpush3.bf16.xpose.msra.mxu0 %v295_v7  ;;  %587 = vmatpush3.bf16.xpose.msra.mxu1 %v295_v7 }
  0x27   : > { %599 = vmatprep.subr.msk.bf16.mxu0 %vm266_vm0, %v669_v8  ;;  %600 = vmatprep.subr.msk.bf16.mxu1 %vm266_vm0, %v669_v8 }
  0x2e   : > { %560 = vmatpush3.bf16.xpose.msra.mxu0 %v292_v9  ;;  %588 = vmatpush3.bf16.xpose.msra.mxu1 %v292_v9 }
  0x2f   : > { %601 = vmatprep.subr.msk.bf16.mxu0 %vm266_vm0, %v670_v10  ;;  %602 = vmatprep.subr.msk.bf16.mxu1 %vm266_vm0, %v670_v10 }
  0x36   : > { %562 = vmatpush3.bf16.xpose.msra.mxu0 %v289_v11  ;;  %589 = vmatpush3.bf16.xpose.msra.mxu1 %v289_v11 }
  0x37   : > { %603 = vmatprep.subr.msk.bf16.mxu0 %vm266_vm0, %v671_v12  ;;  %604 = vmatprep.subr.msk.bf16.mxu1 %vm266_vm0, %v671_v12 }
  0x3e   : > { %564 = vmatpush3.bf16.xpose.msra.mxu0 %v286_v13  ;;  %590 = vmatpush3.bf16.xpose.msra.mxu1 %v286_v13 }
  0x3f   : > { %605 = vmatprep.subr.msk.bf16.mxu0 %vm266_vm0, %v672_v14  ;;  %606 = vmatprep.subr.msk.bf16.mxu1 %vm266_vm0, %v672_v14 }
  0x46   : > { %566 = vmatpush3.bf16.xpose.msra.mxu0 %v283_v15  ;;  %591 = vmatpush3.bf16.xpose.msra.mxu1 %v283_v15 }
  0x47   : > { %607 = vmatprep.subr.msk.bf16.mxu0 %vm266_vm0, %v673_v16  ;;  %608 = vmatprep.subr.msk.bf16.mxu1 %vm266_vm0, %v673_v16 }
  0x4e   : > { %568 = vmatpush3.bf16.xpose.msra.mxu0 %v280_v17  ;;  %592 = vmatpush3.bf16.xpose.msra.mxu1 %v280_v17 }
  0x55   : > { %570 = vmatmul.mubr.msk.bf16.vlgmr.msra.gmra.mxu0 %vm266_vm0, %v676_v18  ;;  %574 = vmatmul.mubr.msk.bf16.vlgmr.msra.gmra.mxu1 %vm266_vm0, %v677_v19 }
 0x115   : > { %v571_v20 = vpop.f32.mrf.mxu0  ;;  %v575_v21 = vpop.f32.mrf.mxu1 }
 0x116   : > { %v370_v22 = vmul.f32 0.5, %v571_v20  ;;  %v374_v23 = vmul.f32 0.5, %v575_v21 }
 0x117   : > { %v337_v24 = vpop.f32.mrf.mxu0  ;;  %v353_v25 = vpop.f32.mrf.mxu1 }
 0x118   : > { %678 = vtanh.f32 %v370_v22  ;;  %v368_v26 = vmul.f32 0.5, %v337_v24  ;;  %v372_v27 = vmul.f32 0.5, %v353_v25 }
 0x119   : > { %680 = vtanh.f32 %v374_v23  ;;  %v572_v28 = vpop.f32.mrf.mxu0  ;;  %v576_v29 = vpop.f32.mrf.mxu1 }
 0x11a   : > { %682 = vtanh.f32 %v368_v26  ;;  %v371_v30 = vmul.f32 0.5, %v572_v28  ;;  %v375_v31 = vmul.f32 0.5, %v576_v29 }
 0x11b   : > { %684 = vtanh.f32 %v372_v27  ;;  %v340_v32 = vpop.f32.mrf.mxu0  ;;  %v356_v33 = vpop.f32.mrf.mxu1 }
 0x11c   : > { %686 = vtanh.f32 %v371_v30  ;;  %v369_v34 = vmul.f32 0.5, %v340_v32  ;;  %v373_v35 = vmul.f32 0.5, %v356_v33 }
 0x11d   : > { %688 = vtanh.f32 %v375_v31 }
 0x11e   : > { %690 = vtanh.f32 %v369_v34 }
 0x11f   : > { %692 = vtanh.f32 %v373_v35 }
 0x125   : > { %v679_v36 = vpop.eup %678 }
 0x126   : > { %v681_v37 = vpop.eup %680  ;;  %v386_v38 = vmul.f32 0.5, %v679_v36 }
 0x127   : > { %v683_v39 = vpop.eup %682  ;;  %v390_v40 = vmul.f32 0.5, %v681_v37 }
 0x128   : > { %v685_v41 = vpop.eup %684  ;;  %v394_v42 = vadd.f32 0.5, %v386_v38  ;;  %v384_v43 = vmul.f32 0.5, %v683_v39 }
 0x129   : > { %v687_v44 = vpop.eup %686  ;;  %v398_v45 = vadd.f32 0.5, %v390_v40  ;;  %v388_v46 = vmul.f32 0.5, %v685_v41 }
 0x12a   : > { %v689_v47 = vpop.eup %688  ;;  %402 = vst [vmem:[%s167_s28 + $0x10] sm:$0xff] %v394_v42  ;;  %v392_v48 = vadd.f32 0.5, %v384_v43  ;;  %v387_v49 = vmul.f32 0.5, %v687_v44 }
 0x12b   : > { %v691_v50 = vpop.eup %690  ;;  %406 = vst [vmem:[%s167_s28 + $0x30] sm:$0xff] %v398_v45  ;;  %v396_v51 = vadd.f32 0.5, %v388_v46  ;;  %v391_v52 = vmul.f32 0.5, %v689_v47 }
 0x12c   : > { %v693_v53 = vpop.eup %692  ;;  %400 = vst [vmem:[%s167_s28] sm:$0xff] %v392_v48  ;;  %v395_v54 = vadd.f32 0.5, %v387_v49  ;;  %v385_v55 = vmul.f32 0.5, %v691_v50 }
 0x12d   : > { %404 = vst [vmem:[%s167_s28 + $0x20] sm:$0xff] %v396_v51  ;;  %v399_v56 = vadd.f32 0.5, %v391_v52  ;;  %v389_v57 = vmul.f32 0.5, %v693_v53 }
 0x12e   : > { %403 = vst [vmem:[%s167_s28 + $0x18] sm:$0xff] %v395_v54  ;;  %v393_v58 = vadd.f32 0.5, %v385_v55 }
 0x12f   : > { %407 = vst [vmem:[%s167_s28 + $0x38] sm:$0xff] %v399_v56  ;;  %v397_v59 = vadd.f32 0.5, %v389_v57 }
 0x130   : > { %401 = vst [vmem:[%s167_s28 + $0x8] sm:$0xff] %v393_v58 }
 0x131   : > { %405 = vst [vmem:[%s167_s28 + $0x28] sm:$0xff] %v397_v59 }
 0x132   : > { %707 = shalt.err (!%p704_p5)
}
 0x133   : > { %s708_s16 = scalar_lea.hbm %s914_s5, 1024  ;;  %s712_s23 = scalar_lea.hbm %s967_s2, 2048 }
 0x134   : > { %p709_p6 = scmp.ne.s32.totalorder %s914_s5, %s708_s16  ;;  %p713_p10 = scmp.lt.s32.totalorder %s914_s5, %s967_s2 }
 0x135   : > { %p714_p11 = scmp.lt.s32.totalorder %s712_s23, %s708_s16 }
 0x136   : > { %p710_p7 = pnand %p709_p6, %p830_p4 }
 0x137   : > { %p715_p12 = por %p714_p11, %p713_p10 }
 0x138   : > { %p711_p9 = pneg %p710_p7 }
 0x13a   : > { %p716_p13 = pnand %p715_p12, %p711_p9 }
 0x13c   : > { %719 = shalt.err (!%p716_p13)
}
 0x13d   : > { %s773_s26 = smov 128   ;;  %s774_s27 = smov 8  }
 0x13e   : > { %609 = dma.vmem_to_hbm [thread:$0]  (%p830_p4), %s916_s30, 1024, %s914_s5, %s920_s12, %s773_s26, %s773_s26, %s774_s27  }
 0x13f PF: > { %p615_p0 = scmp.ge.s32.totalorder %s770_s14, 2  ;;  %s438_s28 = sand.u32 1, %s750_s9  }
 0x140   : > { %s439_s29 = scalar_lea.sflag [#allocation3], %s438_s28 }
 0x141   : > { %p612_p1 = pnand %p615_p0, %p837_p8 }
 0x143   : > { %p613_p2 = pneg %p612_p1 }
 0x145   : > { %745 = dma.done.wait (%p613_p2), %s439_s29, 1024  }
 0x146   : > { %747 = vsyncadd (%p613_p2), %s439_s29, 4294966272  ;;  %s15_s14 = sadd.s32 1, %s770_s14   ;;  %s970_s9 = smov %s754_s10 }
 0x147   : > { %p12_p3 = scmp.ge.s32.totalorder %s15_s14, 4   ;;  %s971_s10 = smov %s758_s11 }
 0x148   : > { %s972_s11 = smov %s843_s22  ;;  %s973_s12 = smov %s766_s13 }
 0x149   : > { %s974_s13 = smov %s976_s17  ;;  %14 = sbr.rel (!%p12_p3) target bundleno = 4 (0x4), region = 66 }
 0x14e   :  { %444 = vsyncpa [#allocation3], 1 }
 0x14f   :  { %446 = vsyncpa [#allocation3 + $0x1], 1 }

</bundles_post_ra>
